<compile_context>
chip_gen: v7x
topology: tpu7x:2x2x1
jax: 0.10.0
libtpu: 0.0.40
codegen_flags: <defaults>
</compile_context>

<pallas_src>
import functools
import math

import jax
import jax.numpy as jnp
from jax.experimental import pallas as pl
from jax.experimental.pallas import tpu as pltpu


def _abs_diff_partial_kernel(yp_ref, y_ref, out_ref, *, rows_total, tile_rows):
    """Per-tile partial sum of |y_pred - y|.

    yp_ref, y_ref : (tile_rows, 128) VMEM tiles (native dtype, cast in-kernel)
    out_ref       : (8, 128) f32 partial-sum block for this grid step
    """
    a = yp_ref[...].astype(jnp.float32)
    b = y_ref[...].astype(jnp.float32)
    diff = jnp.abs(a - b)

    # (tile_rows, 128) -> (tile_rows//8, 8, 128); summing the leading axis is
    # pure elementwise VPU work (each slice is its own set of vregs).
    partial = jnp.sum(diff.reshape(tile_rows // 8, 8, 128), axis=0)

    rem = rows_total % tile_rows  # static Python value
    if rem == 0:
        out_ref[...] = partial
    else:
        # Only the last grid step has a partial block; mask work is gated so
        # the steady-state steps stay mask-free.
        last = pl.num_programs(0) - 1
        step = pl.program_id(0)

        @pl.when(step != last)
        def _():
            out_ref[...] = partial

        @pl.when(step == last)
        def _():
            row = jax.lax.broadcasted_iota(jnp.int32, diff.shape, 0)
            masked = jnp.where(row < rem, diff, 0.0)
            out_ref[...] = jnp.sum(masked.reshape(tile_rows // 8, 8, 128), axis=0)


@functools.partial(jax.jit, static_argnames=("tile_rows",))
def nllloss_pallas(y_pred, y, tile_rows=8192):
    """Forward of the module: sum(|y_pred - y|) / (B * F) == mean over all elems."""
    n_elems = math.prod(y_pred.shape)

    yp_flat = y_pred.reshape(-1)  # bitcast-style flatten, no copy
    y_flat = y.reshape(-1)

    ip = jnp.dtype(y_pred.dtype).itemsize
    iy = jnp.dtype(y.dtype).itemsize
    # Native sublane granularity: f32 -> 8 rows, bf16 -> 16, int8/fp8 -> 32.
    row_gran = 8 * max(1, 4 // max(ip, iy))

    rows_full = n_elems // 128
    rows = (rows_full // row_gran) * row_gran     # row_gran-aligned kernel rows
    kernel_elems = rows * 128
    tail = n_elems - kernel_elems                  # < row_gran*128 + 128 elems

    if rows == 0:
        # Tiny input: no full aligned slab to stream; plain jnp is optimal.
        total = jnp.sum(
            jnp.abs(yp_flat.astype(jnp.float32) - y_flat.astype(jnp.float32)))
        return (total / jnp.float32(n_elems)).astype(jnp.float32)

    # Tile-rows selection: multiple of row_gran, capped by rows, and prefer
    # >= 2 grid steps so v7x can shard the "parallel" axis across both TCs.
    tile_rows = min(tile_rows, rows)
    if tile_rows == rows and rows >= 2 * row_gran:
        tile_rows = (rows + 1) // 2
    tile_rows = max(row_gran, ((tile_rows + row_gran - 1) // row_gran) * row_gran)
    tile_rows = min(tile_rows, rows)
    n_tiles = (rows + tile_rows - 1) // tile_rows

    if tail == 0:
        yp2 = yp_flat.reshape(rows, 128)           # no copy
        y2 = y_flat.reshape(rows, 128)
        tail_sum = jnp.float32(0.0)
    else:
        # Rare unaligned case: one bulk slice (instead of padding BOTH arrays)
        # plus a tiny (<~4K element) wrapper-side tail reduction.
        yp2 = jax.lax.slice(yp_flat, (0,), (kernel_elems,)).reshape(rows, 128)
        y2 = jax.lax.slice(y_flat, (0,), (kernel_elems,)).reshape(rows, 128)
        tail_sum = jnp.sum(
            jnp.abs(yp_flat[kernel_elems:].astype(jnp.float32)
                    - y_flat[kernel_elems:].astype(jnp.float32)))

    kernel = functools.partial(
        _abs_diff_partial_kernel, rows_total=rows, tile_rows=tile_rows
    )

    # VMEM budget: 2 inputs x 2 pipeline buffers of native-dtype tiles plus
    # headroom for the f32 elementwise temporaries; clamped under v7x's 64 MiB.
    in_tile_bytes = tile_rows * 128 * (ip + iy)
    f32_tile_bytes = tile_rows * 128 * 4
    vmem_limit = int(min(60 << 20, max(32 << 20, 2 * in_tile_bytes + 6 * f32_tile_bytes)))

    cost = pl.CostEstimate(
        flops=3 * kernel_elems,                    # sub + abs + add per element
        transcendentals=0,
        bytes_accessed=kernel_elems * (ip + iy) + n_tiles * 8 * 128 * 4,
    )

    partials = pl.pallas_call(
        kernel,
        out_shape=jax.ShapeDtypeStruct((n_tiles * 8, 128), jnp.float32),
        grid_spec=pltpu.PrefetchScalarGridSpec(
            num_scalar_prefetch=0,
            grid=(n_tiles,),
            in_specs=[
                pl.BlockSpec((tile_rows, 128), lambda i: (i, 0)),
                pl.BlockSpec((tile_rows, 128), lambda i: (i, 0)),
            ],
            out_specs=pl.BlockSpec((8, 128), lambda i: (i, 0)),
        ),
        compiler_params=pltpu.CompilerParams(
            dimension_semantics=("parallel",),
            vmem_limit_bytes=vmem_limit,
        ),
        cost_estimate=cost,
    )(yp2, y2)

    # Tiny final reduction + normalization by the original element count
    # (B * F, exactly what the PyTorch module divides by).
    total = jnp.sum(partials) + tail_sum
    return (total / jnp.float32(n_elems)).astype(jnp.float32)


if __name__ == "__main__":
    key = jax.random.PRNGKey(0)
    k1, k2 = jax.random.split(key)

    # Small NCHW-like prediction/target pair, consistent with the module.
    y_pred = jax.random.normal(k1, (2, 4, 16, 16), dtype=jnp.float32)
    y = jax.random.normal(k2, (2, 4, 16, 16), dtype=jnp.float32)

    out = nllloss_pallas(y_pred, y)
    jax.block_until_ready(out)

    # Reference (same math as the PyTorch module).
    ref = jnp.sum(jnp.abs(y_pred.reshape(2, -1) - y.reshape(2, -1))) / (2 * 4 * 16 * 16)
    assert jnp.allclose(out, ref, rtol=1e-5, atol=1e-6), (out, ref)

    print("KERNEL_OK")
</pallas_src>

<mosaic_0001>
module attributes {stable_mosaic.version = 11 : i64} {
  func.func @_abs_diff_partial_kernel(%arg0: i32, %arg1: memref<8x128xf32, #tpu.memory_space<vmem>>, %arg2: memref<8x128xf32, #tpu.memory_space<vmem>>, %arg3: memref<8x128xf32, #tpu.memory_space<vmem>>) attributes {dimension_semantics = [#tpu.dimension_semantics<parallel>], iteration_bounds = array<i64: 2>, scalar_prefetch = 0 : i64, scratch_operands = 0 : i64, tpu.core_type = #tpu.core_type<tc>, window_params = [{transform_indices = @transform_0, window_bounds = array<i64: 8, 128>}, {transform_indices = @transform_1, window_bounds = array<i64: 8, 128>}, {transform_indices = @transform_2, window_bounds = array<i64: 8, 128>}]} {
    %c0 = arith.constant 0 : index
    %c0_0 = arith.constant 0 : index
    %0 = vector.load %arg1[%c0, %c0_0] : memref<8x128xf32, #tpu.memory_space<vmem>>, vector<8x128xf32>
    %c0_1 = arith.constant 0 : index
    %c0_2 = arith.constant 0 : index
    %1 = vector.load %arg2[%c0_1, %c0_2] : memref<8x128xf32, #tpu.memory_space<vmem>>, vector<8x128xf32>
    %2 = arith.subf %0, %1 : vector<8x128xf32>
    %3 = math.absf %2 : vector<8x128xf32>
    %4 = vector.shape_cast %3 : vector<8x128xf32> to vector<1x8x128xf32>
    %cst = arith.constant dense<0.000000e+00> : vector<8x128xf32>
    %5 = vector.multi_reduction <add>, %4, %cst [0] : vector<1x8x128xf32> to vector<8x128xf32>
    %c0_3 = arith.constant 0 : index
    %c0_4 = arith.constant 0 : index
    %6 = vector.load %arg3[%c0_3, %c0_4] : memref<8x128xf32, #tpu.memory_space<vmem>>, vector<8x128xf32>
    tpu.vector_store %arg3[%c0_3, %c0_4], %5 {strides = array<i32>} : memref<8x128xf32, #tpu.memory_space<vmem>>, vector<8x128xf32>,
    return
  }
  func.func @transform_0(%arg0: i32) -> (i32, i32) {
    %c0_i32 = arith.constant 0 : i32
    %c0_i32_0 = arith.constant 0 : i32
    return %arg0, %c0_i32 : i32, i32
  }
  func.func @transform_1(%arg0: i32) -> (i32, i32) {
    %c0_i32 = arith.constant 0 : i32
    %c0_i32_0 = arith.constant 0 : i32
    return %arg0, %c0_i32 : i32, i32
  }
  func.func @transform_2(%arg0: i32) -> (i32, i32) {
    %c0_i32 = arith.constant 0 : i32
    %c0_i32_0 = arith.constant 0 : i32
    return %arg0, %c0_i32 : i32, i32
  }
}

</mosaic_0001>

<bundles_post_ra>
// kernel: nllloss_pallas.1
= control target key start
LH: loop header
LB: loop body
LE: loop exit
PB: predicated region body
PF: predicated region fallthrough
CT: control target
= control target key end

     0   :  { %s249_s9 = smov 0   ;;  %s277_s0 = inlined_call_operand.vmem [shape: f32[16,128], index: 0, kind: input, shape index: {}]   ;;  %s278_s1 = inlined_call_operand.vmem [shape: f32[16,128], index: 1, kind: input, shape index: {}]   ;;  %s279_s2 = inlined_call_operand.vmem [shape: f32[16,128], index: 2, kind: output, shape index: {}]  }
   0x1 LB: > { %s227_s10 = sadd.s32 4294967295, %s251_s9   ;;  %p231_p0 = scmp.ge.s32.totalorder %s251_s9, 1  ;;  %s251_s9 = sphi %s249_s9, %s12_s9  }
   0x2   : > { %p120_p1 = scmp.lt.s32.totalorder %s251_s9, 3 }
   0x4   : > { %p121_p2 = pnand %p231_p0, %p120_p1 }
   0x5   : > { %p144_p3 = scmp.lt.s32.totalorder (!%p121_p2), %s227_s10, 1 }
   0x6   : > { %124 = sbr.rel (%p121_p2) target bundleno = 23 (0x17), region = 28 }
   0xd   : > { %s281_s10 = smov (!%p144_p3, %s227_s10), 1 }
   0xe   : > { %s232_s11 = sshll.u32 %s281_s10, 3 }
   0xf   : > { %s147_s14 = scalar_lea.vmem %s277_s0, %s232_s11  ;;  %s151_s17 = scalar_lea.vmem %s278_s1, %s232_s11 }
  0x10   : > { %v156_v0 = vld [vmem:[%s147_s14] sm:$0xff]  ;;  %s155_s20 = scalar_lea.vmem %s279_s2, %s232_s11 }
  0x11   : > { %v157_v1 = vld [vmem:[%s151_s17] sm:$0xff] }
  0x12   : > { %v158_v2 = vsub.f32 %v156_v0, %v157_v1 }
  0x14   : > { %v159_v3 = vand.u32 2147483647, %v158_v2 }
  0x16   : > { %161 = vst [vmem:[%s155_s20] sm:$0xff] %v159_v3 }
  0x17 PF: > { %s12_s9 = sadd.s32 1, %s251_s9  }
  0x18   : > { %p9_p4 = scmp.ge.s32.totalorder %s12_s9, 4  }
  0x1a   :  { %11 = sbr.rel (!%p9_p4) target bundleno = 1 (0x1), region = 61 }

</bundles_post_ra>
